<compile_context>
chip_gen: v5e
topology: v5e:2x2
jax: 0.10.0
libtpu: 0.0.40
codegen_flags: <defaults>
</compile_context>

<pallas_src>
import jax
import jax.numpy as jnp
from jax.experimental import pallas as pl
from jax.experimental.pallas import tpu as pltpu

HID = 10            # LSTM hidden size
NCLS = 3            # Linear(10, 3)
KSIZE = 3           # conv kernel size == stride
NGATES = 4          # LSTM gates in PyTorch order: i, f, g, o

# Packed parameter-buffer layout (rows x 128 lanes, f32).  The (H,H) recurrent blocks
# start on 8-row boundaries; everything else is one-time prologue loads.
_ROW_CONV = 0                                    # rows 0..3, lane 0: [w0; w1; w2; conv_b]
_ROW_GATE = 8                                    # gate g block: rows 8+16g .. 8+16g+11
_GATE_STRIDE = 16                                #   rows 0..9 : W_hh_g (H, H)
                                                 #   row  10   : w_ih_g (1, H)
                                                 #   row  11   : b_g    (1, H)  (b_ih+b_hh)
_ROW_MLP = _ROW_GATE + NGATES * _GATE_STRIDE     # rows 72..81: W_mlp (H, 3)
_ROW_MLP_B = _ROW_MLP + HID                      # row 82     : b_mlp (1, 3)
_PROWS = 88                                      # padded to a multiple of 8
_PLANES = 128                                    # lane-dense -> one clean contiguous DMA


def _sigmoid(z):
    # sigmoid(z) = 0.5*(tanh(z/2)+1): one EUP op + cheap VPU mul/add, no divide.
    return 0.5 * (jnp.tanh(0.5 * z) + 1.0)


def net_kernel(win_ref, pbuf_ref, out_ref):
    """win_ref : (T*B, KSIZE+1) VMEM  conv windows, last column == 1 (folds conv bias)
       pbuf_ref: (_PROWS, 128)  VMEM  packed parameters (layout above)
       out_ref : (B, NCLS)      VMEM"""
    TB = win_ref.shape[0]
    B = out_ref.shape[0]
    T = TB // B

    # --- Conv1d(k=3, stride=3) + bias + ReLU as one MXU matmul, (time, batch) rows ----
    cvec = pbuf_ref[_ROW_CONV:_ROW_CONV + KSIZE + 1, 0:1]             # (4, 1)
    conv = jnp.dot(win_ref[...], cvec, preferred_element_type=jnp.float32)
    conv = jnp.maximum(conv, 0.0)                                     # (T*B, 1)

    # --- gate-major parameter loads + input-side pre-activations for ALL steps --------
    # xg[g][t*B + b, :] = conv[t, b] * w_ih_g + b_g   (MXU outer product, off the serial
    # chain, kept in registers -- no VMEM scratch round trip).
    whh = []
    xg = []
    for g in range(NGATES):
        r = _ROW_GATE + g * _GATE_STRIDE
        whh.append(pbuf_ref[r:r + HID, 0:HID])                        # (H, H)
        wih_g = pbuf_ref[r + HID:r + HID + 1, 0:HID]                  # (1, H)
        bg_g = pbuf_ref[r + HID + 1:r + HID + 2, 0:HID]               # (1, H)
        xg.append(jnp.dot(conv, wih_g, preferred_element_type=jnp.float32) + bg_g)

    # --- LSTM recurrence, fully unrolled (T is a trace-time constant) -----------------
    # Step 0 peeled: h0 = c0 = 0, so the recurrent matmuls (and f*c) are skipped.
    i0 = _sigmoid(xg[0][0:B, :])
    g0 = jnp.tanh(xg[2][0:B, :])
    o0 = _sigmoid(xg[3][0:B, :])
    c = i0 * g0
    h = o0 * jnp.tanh(c)

    for t in range(1, T):
        lo = t * B
        # Four lane-aligned per-gate matmuls; the xg row slices are carry-independent
        # and get scheduled into idle slots, so the critical chain per step is just
        # MXU push/drain -> VPU add -> EUP -> VPU.
        pre = [xg[g][lo:lo + B, :] +
               jnp.dot(h, whh[g], preferred_element_type=jnp.float32)
               for g in range(NGATES)]
        i_t = _sigmoid(pre[0])
        f_t = _sigmoid(pre[1])
        g_t = jnp.tanh(pre[2])
        o_t = _sigmoid(pre[3])
        c = f_t * c + i_t * g_t
        h = o_t * jnp.tanh(c)

    # --- Linear(10, 3) on the final hidden state (fused; dwarfed by the RNN) ----------
    w_mlp = pbuf_ref[_ROW_MLP:_ROW_MLP + HID, 0:NCLS]                 # (H, 3)
    b_mlp = pbuf_ref[_ROW_MLP_B:_ROW_MLP_B + 1, 0:NCLS]               # (1, 3)
    out_ref[...] = jnp.dot(h, w_mlp, preferred_element_type=jnp.float32) + b_mlp


def pack_params(p):
    """Pack every parameter (~550 f32) into one lane-dense (88, 128) buffer -> 1 DMA."""
    buf = jnp.zeros((_PROWS, _PLANES), jnp.float32)
    buf = buf.at[_ROW_CONV:_ROW_CONV + KSIZE, 0].set(p["conv_w"])
    buf = buf.at[_ROW_CONV + KSIZE, 0].set(p["conv_b"][0])
    for g in range(NGATES):
        r = _ROW_GATE + g * _GATE_STRIDE
        buf = buf.at[r:r + HID, 0:HID].set(p["w_hh"][g])
        buf = buf.at[r + HID, 0:HID].set(p["w_ih"][g, 0])
        buf = buf.at[r + HID + 1, 0:HID].set(p["b_g"][g, 0])
    buf = buf.at[_ROW_MLP:_ROW_MLP + HID, 0:NCLS].set(p["w_mlp"])
    buf = buf.at[_ROW_MLP_B, 0:NCLS].set(p["b_mlp"][0])
    return buf


def net_forward(x, params):
    """x: (B, L, 1) float32 (PyTorch-equivalent input layout)."""
    B, L, C = x.shape
    assert C == 1
    T = (L - KSIZE) // KSIZE + 1

    # Strided conv windows, time-major rows: win[t*B + b, k] = x[b, 3t+k, 0], plus a
    # trailing ones column so the conv bias folds into the same MXU matmul.
    sig = x[:, :KSIZE * T, 0]                                         # (B, K*T)
    win = jnp.transpose(sig.reshape(B, T, KSIZE), (1, 0, 2)).reshape(T * B, KSIZE)
    win = jnp.concatenate([win, jnp.ones((T * B, 1), jnp.float32)], axis=1)

    pbuf = pack_params(params)                                        # (88, 128), one DMA

    vmem = pl.BlockSpec(memory_space=pltpu.MemorySpace.VMEM)
    return pl.pallas_call(
        net_kernel,
        out_shape=jax.ShapeDtypeStruct((B, NCLS), jnp.float32),
        in_specs=[vmem, vmem],
        out_specs=vmem,
    )(win, pbuf)


def init_params(key):
    """Deterministic parameter init (shapes from Net.__init__, kernel-friendly form)."""
    ks = jax.random.split(key, 6)
    kc = 1.0 / jnp.sqrt(1.0 * KSIZE)      # Conv1d fan-in = in_channels * kernel_size
    kl = 1.0 / jnp.sqrt(float(HID))       # LSTM / Linear fan-in = hidden
    u = lambda k, s, b: jax.random.uniform(k, s, jnp.float32, -b, b)
    return {
        "conv_w": u(ks[0], (KSIZE,), kc),                  # Conv1d weight (1,1,3) squeezed
        "conv_b": u(ks[1], (1,), kc),                      # Conv1d bias
        "w_ih": u(ks[2], (NGATES, 1, HID), kl),            # per-gate input weights (i,f,g,o)
        "w_hh": u(ks[3], (NGATES, HID, HID), kl),          # per-gate recurrent weights
        "b_g": u(ks[4], (NGATES, 1, HID), 2 * kl),         # b_ih + b_hh combined per gate
        "w_mlp": u(ks[5], (HID, NCLS), kl),                # Linear(10,3) weight (transposed)
        "b_mlp": jnp.zeros((1, NCLS), jnp.float32),        # Linear bias
    }


def reference_forward(x, p):
    """Pure-JAX reference mirroring the PyTorch forward."""
    B, L, _ = x.shape
    T = (L - KSIZE) // KSIZE + 1
    sig = x[:, : KSIZE * T, 0]
    win = sig.reshape(B, T, KSIZE)
    conv = jnp.einsum("btk,k->bt", win, p["conv_w"]) + p["conv_b"][0]
    conv = jnp.maximum(conv, 0.0)                                     # (B, T)
    sg = lambda z: 1.0 / (1.0 + jnp.exp(-z))
    h = jnp.zeros((B, HID), jnp.float32)
    c = jnp.zeros((B, HID), jnp.float32)
    for t in range(T):
        x_t = conv[:, t][:, None]
        pre = [x_t * p["w_ih"][k] + h @ p["w_hh"][k] + p["b_g"][k] for k in range(NGATES)]
        i, f = sg(pre[0]), sg(pre[1])
        g, o = jnp.tanh(pre[2]), sg(pre[3])
        c = f * c + i * g
        h = o * jnp.tanh(c)
    return h @ p["w_mlp"] + p["b_mlp"]


if __name__ == "__main__":
    key = jax.random.PRNGKey(0)
    k_x, k_p = jax.random.split(key)

    B, L = 2, 24                                   # seq after conv: T = 8
    x = jax.random.normal(k_x, (B, L, 1), jnp.float32)
    params = init_params(k_p)

    out = jax.block_until_ready(net_forward(x, params))

    ref = reference_forward(x, params)
    assert out.shape == (B, NCLS)
    assert jnp.allclose(out, ref, rtol=1e-3, atol=1e-3), (out, ref)

    print("KERNEL_OK")
</pallas_src>

<mosaic_0001>
module attributes {stable_mosaic.version = 11 : i64} {
  func.func @net_kernel(%arg0: memref<16x4xf32, #tpu.memory_space<vmem>>, %arg1: memref<88x128xf32, #tpu.memory_space<vmem>>, %arg2: memref<2x3xf32, #tpu.memory_space<vmem>>) attributes {dimension_semantics = [], scalar_prefetch = 0 : i64, scratch_operands = 0 : i64, tpu.core_type = #tpu.core_type<tc>} {
    %c0 = arith.constant 0 : index
    %c0_0 = arith.constant 0 : index
    %0 = vector.load %arg1[%c0, %c0_0] : memref<88x128xf32, #tpu.memory_space<vmem>>, vector<4x1xf32>
    %c0_1 = arith.constant 0 : index
    %c0_2 = arith.constant 0 : index
    %1 = vector.load %arg0[%c0_1, %c0_2] : memref<16x4xf32, #tpu.memory_space<vmem>>, vector<16x4xf32>
    %cst = arith.constant dense<0.000000e+00> : vector<16x1xf32>
    %2 = tpu.matmul %1, %0, %cst {dimension_numbers = #tpu.dot_dimension_numbers<[1], [0], [0], [1], [0, 0, 1, 1], [], []>} : vector<16x4xf32>, vector<4x1xf32>, vector<16x1xf32> -> vector<16x1xf32>
    %cst_3 = arith.constant 0.000000e+00 : f32
    %3 = vector.broadcast %cst_3 : f32 to vector<16x1xf32>
    %4 = arith.maximumf %2, %3 : vector<16x1xf32>
    %c8 = arith.constant 8 : index
    %c0_4 = arith.constant 0 : index
    %5 = vector.load %arg1[%c8, %c0_4] : memref<88x128xf32, #tpu.memory_space<vmem>>, vector<10x10xf32>
    %c18 = arith.constant 18 : index
    %c0_5 = arith.constant 0 : index
    %6 = vector.load %arg1[%c18, %c0_5] : memref<88x128xf32, #tpu.memory_space<vmem>>, vector<1x10xf32>
    %c19 = arith.constant 19 : index
    %c0_6 = arith.constant 0 : index
    %7 = vector.load %arg1[%c19, %c0_6] : memref<88x128xf32, #tpu.memory_space<vmem>>, vector<1x10xf32>
    %cst_7 = arith.constant dense<0.000000e+00> : vector<16x10xf32>
    %8 = tpu.matmul %4, %6, %cst_7 {dimension_numbers = #tpu.dot_dimension_numbers<[1], [0], [0], [1], [0, 0, 1, 1], [], []>} : vector<16x1xf32>, vector<1x10xf32>, vector<16x10xf32> -> vector<16x10xf32>
    %9 = vector.broadcast %7 : vector<1x10xf32> to vector<16x10xf32>
    %10 = arith.addf %8, %9 : vector<16x10xf32>
    %c24 = arith.constant 24 : index
    %c0_8 = arith.constant 0 : index
    %11 = vector.load %arg1[%c24, %c0_8] : memref<88x128xf32, #tpu.memory_space<vmem>>, vector<10x10xf32>
    %c34 = arith.constant 34 : index
    %c0_9 = arith.constant 0 : index
    %12 = vector.load %arg1[%c34, %c0_9] : memref<88x128xf32, #tpu.memory_space<vmem>>, vector<1x10xf32>
    %c35 = arith.constant 35 : index
    %c0_10 = arith.constant 0 : index
    %13 = vector.load %arg1[%c35, %c0_10] : memref<88x128xf32, #tpu.memory_space<vmem>>, vector<1x10xf32>
    %cst_11 = arith.constant dense<0.000000e+00> : vector<16x10xf32>
    %14 = tpu.matmul %4, %12, %cst_11 {dimension_numbers = #tpu.dot_dimension_numbers<[1], [0], [0], [1], [0, 0, 1, 1], [], []>} : vector<16x1xf32>, vector<1x10xf32>, vector<16x10xf32> -> vector<16x10xf32>
    %15 = vector.broadcast %13 : vector<1x10xf32> to vector<16x10xf32>
    %16 = arith.addf %14, %15 : vector<16x10xf32>
    %c40 = arith.constant 40 : index
    %c0_12 = arith.constant 0 : index
    %17 = vector.load %arg1[%c40, %c0_12] : memref<88x128xf32, #tpu.memory_space<vmem>>, vector<10x10xf32>
    %c50 = arith.constant 50 : index
    %c0_13 = arith.constant 0 : index
    %18 = vector.load %arg1[%c50, %c0_13] : memref<88x128xf32, #tpu.memory_space<vmem>>, vector<1x10xf32>
    %c51 = arith.constant 51 : index
    %c0_14 = arith.constant 0 : index
    %19 = vector.load %arg1[%c51, %c0_14] : memref<88x128xf32, #tpu.memory_space<vmem>>, vector<1x10xf32>
    %cst_15 = arith.constant dense<0.000000e+00> : vector<16x10xf32>
    %20 = tpu.matmul %4, %18, %cst_15 {dimension_numbers = #tpu.dot_dimension_numbers<[1], [0], [0], [1], [0, 0, 1, 1], [], []>} : vector<16x1xf32>, vector<1x10xf32>, vector<16x10xf32> -> vector<16x10xf32>
    %21 = vector.broadcast %19 : vector<1x10xf32> to vector<16x10xf32>
    %22 = arith.addf %20, %21 : vector<16x10xf32>
    %c56 = arith.constant 56 : index
    %c0_16 = arith.constant 0 : index
    %23 = vector.load %arg1[%c56, %c0_16] : memref<88x128xf32, #tpu.memory_space<vmem>>, vector<10x10xf32>
    %c66 = arith.constant 66 : index
    %c0_17 = arith.constant 0 : index
    %24 = vector.load %arg1[%c66, %c0_17] : memref<88x128xf32, #tpu.memory_space<vmem>>, vector<1x10xf32>
    %c67 = arith.constant 67 : index
    %c0_18 = arith.constant 0 : index
    %25 = vector.load %arg1[%c67, %c0_18] : memref<88x128xf32, #tpu.memory_space<vmem>>, vector<1x10xf32>
    %cst_19 = arith.constant dense<0.000000e+00> : vector<16x10xf32>
    %26 = tpu.matmul %4, %24, %cst_19 {dimension_numbers = #tpu.dot_dimension_numbers<[1], [0], [0], [1], [0, 0, 1, 1], [], []>} : vector<16x1xf32>, vector<1x10xf32>, vector<16x10xf32> -> vector<16x10xf32>
    %27 = vector.broadcast %25 : vector<1x10xf32> to vector<16x10xf32>
    %28 = arith.addf %26, %27 : vector<16x10xf32>
    %29 = vector.extract_strided_slice %10 {offsets = [0, 0], sizes = [2, 10], strides = [1, 1]} : vector<16x10xf32> to vector<2x10xf32>
    %cst_20 = arith.constant 5.000000e-01 : f32
    %30 = vector.broadcast %cst_20 : f32 to vector<2x10xf32>
    %31 = arith.mulf %30, %29 : vector<2x10xf32>
    %32 = math.tanh %31 : vector<2x10xf32>
    %cst_21 = arith.constant 1.000000e+00 : f32
    %33 = vector.broadcast %cst_21 : f32 to vector<2x10xf32>
    %34 = arith.addf %32, %33 : vector<2x10xf32>
    %cst_22 = arith.constant 5.000000e-01 : f32
    %35 = vector.broadcast %cst_22 : f32 to vector<2x10xf32>
    %36 = arith.mulf %35, %34 : vector<2x10xf32>
    %37 = vector.extract_strided_slice %22 {offsets = [0, 0], sizes = [2, 10], strides = [1, 1]} : vector<16x10xf32> to vector<2x10xf32>
    %38 = math.tanh %37 : vector<2x10xf32>
    %39 = vector.extract_strided_slice %28 {offsets = [0, 0], sizes = [2, 10], strides = [1, 1]} : vector<16x10xf32> to vector<2x10xf32>
    %cst_23 = arith.constant 5.000000e-01 : f32
    %40 = vector.broadcast %cst_23 : f32 to vector<2x10xf32>
    %41 = arith.mulf %40, %39 : vector<2x10xf32>
    %42 = math.tanh %41 : vector<2x10xf32>
    %cst_24 = arith.constant 1.000000e+00 : f32
    %43 = vector.broadcast %cst_24 : f32 to vector<2x10xf32>
    %44 = arith.addf %42, %43 : vector<2x10xf32>
    %cst_25 = arith.constant 5.000000e-01 : f32
    %45 = vector.broadcast %cst_25 : f32 to vector<2x10xf32>
    %46 = arith.mulf %45, %44 : vector<2x10xf32>
    %47 = arith.mulf %36, %38 : vector<2x10xf32>
    %48 = math.tanh %47 : vector<2x10xf32>
    %49 = arith.mulf %46, %48 : vector<2x10xf32>
    %50 = vector.extract_strided_slice %10 {offsets = [2, 0], sizes = [2, 10], strides = [1, 1]} : vector<16x10xf32> to vector<2x10xf32>
    %cst_26 = arith.constant dense<0.000000e+00> : vector<2x10xf32>
    %51 = tpu.matmul %49, %5, %cst_26 {dimension_numbers = #tpu.dot_dimension_numbers<[1], [0], [0], [1], [0, 0, 1, 1], [], []>} : vector<2x10xf32>, vector<10x10xf32>, vector<2x10xf32> -> vector<2x10xf32>
    %52 = arith.addf %50, %51 : vector<2x10xf32>
    %53 = vector.extract_strided_slice %16 {offsets = [2, 0], sizes = [2, 10], strides = [1, 1]} : vector<16x10xf32> to vector<2x10xf32>
    %cst_27 = arith.constant dense<0.000000e+00> : vector<2x10xf32>
    %54 = tpu.matmul %49, %11, %cst_27 {dimension_numbers = #tpu.dot_dimension_numbers<[1], [0], [0], [1], [0, 0, 1, 1], [], []>} : vector<2x10xf32>, vector<10x10xf32>, vector<2x10xf32> -> vector<2x10xf32>
    %55 = arith.addf %53, %54 : vector<2x10xf32>
    %56 = vector.extract_strided_slice %22 {offsets = [2, 0], sizes = [2, 10], strides = [1, 1]} : vector<16x10xf32> to vector<2x10xf32>
    %cst_28 = arith.constant dense<0.000000e+00> : vector<2x10xf32>
    %57 = tpu.matmul %49, %17, %cst_28 {dimension_numbers = #tpu.dot_dimension_numbers<[1], [0], [0], [1], [0, 0, 1, 1], [], []>} : vector<2x10xf32>, vector<10x10xf32>, vector<2x10xf32> -> vector<2x10xf32>
    %58 = arith.addf %56, %57 : vector<2x10xf32>
    %59 = vector.extract_strided_slice %28 {offsets = [2, 0], sizes = [2, 10], strides = [1, 1]} : vector<16x10xf32> to vector<2x10xf32>
    %cst_29 = arith.constant dense<0.000000e+00> : vector<2x10xf32>
    %60 = tpu.matmul %49, %23, %cst_29 {dimension_numbers = #tpu.dot_dimension_numbers<[1], [0], [0], [1], [0, 0, 1, 1], [], []>} : vector<2x10xf32>, vector<10x10xf32>, vector<2x10xf32> -> vector<2x10xf32>
    %61 = arith.addf %59, %60 : vector<2x10xf32>
    %cst_30 = arith.constant 5.000000e-01 : f32
    %62 = vector.broadcast %cst_30 : f32 to vector<2x10xf32>
    %63 = arith.mulf %62, %52 : vector<2x10xf32>
    %64 = math.tanh %63 : vector<2x10xf32>
    %cst_31 = arith.constant 1.000000e+00 : f32
    %65 = vector.broadcast %cst_31 : f32 to vector<2x10xf32>
    %66 = arith.addf %64, %65 : vector<2x10xf32>
    %cst_32 = arith.constant 5.000000e-01 : f32
    %67 = vector.broadcast %cst_32 : f32 to vector<2x10xf32>
    %68 = arith.mulf %67, %66 : vector<2x10xf32>
    %cst_33 = arith.constant 5.000000e-01 : f32
    %69 = vector.broadcast %cst_33 : f32 to vector<2x10xf32>
    %70 = arith.mulf %69, %55 : vector<2x10xf32>
    %71 = math.tanh %70 : vector<2x10xf32>
    %cst_34 = arith.constant 1.000000e+00 : f32
    %72 = vector.broadcast %cst_34 : f32 to vector<2x10xf32>
    %73 = arith.addf %71, %72 : vector<2x10xf32>
    %cst_35 = arith.constant 5.000000e-01 : f32
    %74 = vector.broadcast %cst_35 : f32 to vector<2x10xf32>
    %75 = arith.mulf %74, %73 : vector<2x10xf32>
    %76 = math.tanh %58 : vector<2x10xf32>
    %cst_36 = arith.constant 5.000000e-01 : f32
    %77 = vector.broadcast %cst_36 : f32 to vector<2x10xf32>
    %78 = arith.mulf %77, %61 : vector<2x10xf32>
    %79 = math.tanh %78 : vector<2x10xf32>
    %cst_37 = arith.constant 1.000000e+00 : f32
    %80 = vector.broadcast %cst_37 : f32 to vector<2x10xf32>
    %81 = arith.addf %79, %80 : vector<2x10xf32>
    %cst_38 = arith.constant 5.000000e-01 : f32
    %82 = vector.broadcast %cst_38 : f32 to vector<2x10xf32>
    %83 = arith.mulf %82, %81 : vector<2x10xf32>
    %84 = arith.mulf %75, %47 : vector<2x10xf32>
    %85 = arith.mulf %68, %76 : vector<2x10xf32>
    %86 = arith.addf %84, %85 : vector<2x10xf32>
    %87 = math.tanh %86 : vector<2x10xf32>
    %88 = arith.mulf %83, %87 : vector<2x10xf32>
    %89 = vector.extract_strided_slice %10 {offsets = [4, 0], sizes = [2, 10], strides = [1, 1]} : vector<16x10xf32> to vector<2x10xf32>
    %cst_39 = arith.constant dense<0.000000e+00> : vector<2x10xf32>
    %90 = tpu.matmul %88, %5, %cst_39 {dimension_numbers = #tpu.dot_dimension_numbers<[1], [0], [0], [1], [0, 0, 1, 1], [], []>} : vector<2x10xf32>, vector<10x10xf32>, vector<2x10xf32> -> vector<2x10xf32>
    %91 = arith.addf %89, %90 : vector<2x10xf32>
    %92 = vector.extract_strided_slice %16 {offsets = [4, 0], sizes = [2, 10], strides = [1, 1]} : vector<16x10xf32> to vector<2x10xf32>
    %cst_40 = arith.constant dense<0.000000e+00> : vector<2x10xf32>
    %93 = tpu.matmul %88, %11, %cst_40 {dimension_numbers = #tpu.dot_dimension_numbers<[1], [0], [0], [1], [0, 0, 1, 1], [], []>} : vector<2x10xf32>, vector<10x10xf32>, vector<2x10xf32> -> vector<2x10xf32>
    %94 = arith.addf %92, %93 : vector<2x10xf32>
    %95 = vector.extract_strided_slice %22 {offsets = [4, 0], sizes = [2, 10], strides = [1, 1]} : vector<16x10xf32> to vector<2x10xf32>
    %cst_41 = arith.constant dense<0.000000e+00> : vector<2x10xf32>
    %96 = tpu.matmul %88, %17, %cst_41 {dimension_numbers = #tpu.dot_dimension_numbers<[1], [0], [0], [1], [0, 0, 1, 1], [], []>} : vector<2x10xf32>, vector<10x10xf32>, vector<2x10xf32> -> vector<2x10xf32>
    %97 = arith.addf %95, %96 : vector<2x10xf32>
    %98 = vector.extract_strided_slice %28 {offsets = [4, 0], sizes = [2, 10], strides = [1, 1]} : vector<16x10xf32> to vector<2x10xf32>
    %cst_42 = arith.constant dense<0.000000e+00> : vector<2x10xf32>
    %99 = tpu.matmul %88, %23, %cst_42 {dimension_numbers = #tpu.dot_dimension_numbers<[1], [0], [0], [1], [0, 0, 1, 1], [], []>} : vector<2x10xf32>, vector<10x10xf32>, vector<2x10xf32> -> vector<2x10xf32>
    %100 = arith.addf %98, %99 : vector<2x10xf32>
    %cst_43 = arith.constant 5.000000e-01 : f32
    %101 = vector.broadcast %cst_43 : f32 to vector<2x10xf32>
    %102 = arith.mulf %101, %91 : vector<2x10xf32>
    %103 = math.tanh %102 : vector<2x10xf32>
    %cst_44 = arith.constant 1.000000e+00 : f32
    %104 = vector.broadcast %cst_44 : f32 to vector<2x10xf32>
    %105 = arith.addf %103, %104 : vector<2x10xf32>
    %cst_45 = arith.constant 5.000000e-01 : f32
    %106 = vector.broadcast %cst_45 : f32 to vector<2x10xf32>
    %107 = arith.mulf %106, %105 : vector<2x10xf32>
    %cst_46 = arith.constant 5.000000e-01 : f32
    %108 = vector.broadcast %cst_46 : f32 to vector<2x10xf32>
    %109 = arith.mulf %108, %94 : vector<2x10xf32>
    %110 = math.tanh %109 : vector<2x10xf32>
    %cst_47 = arith.constant 1.000000e+00 : f32
    %111 = vector.broadcast %cst_47 : f32 to vector<2x10xf32>
    %112 = arith.addf %110, %111 : vector<2x10xf32>
    %cst_48 = arith.constant 5.000000e-01 : f32
    %113 = vector.broadcast %cst_48 : f32 to vector<2x10xf32>
    %114 = arith.mulf %113, %112 : vector<2x10xf32>
    %115 = math.tanh %97 : vector<2x10xf32>
    %cst_49 = arith.constant 5.000000e-01 : f32
    %116 = vector.broadcast %cst_49 : f32 to vector<2x10xf32>
    %117 = arith.mulf %116, %100 : vector<2x10xf32>
    %118 = math.tanh %117 : vector<2x10xf32>
    %cst_50 = arith.constant 1.000000e+00 : f32
    %119 = vector.broadcast %cst_50 : f32 to vector<2x10xf32>
    %120 = arith.addf %118, %119 : vector<2x10xf32>
    %cst_51 = arith.constant 5.000000e-01 : f32
    %121 = vector.broadcast %cst_51 : f32 to vector<2x10xf32>
    %122 = arith.mulf %121, %120 : vector<2x10xf32>
    %123 = arith.mulf %114, %86 : vector<2x10xf32>
    %124 = arith.mulf %107, %115 : vector<2x10xf32>
    %125 = arith.addf %123, %124 : vector<2x10xf32>
    %126 = math.tanh %125 : vector<2x10xf32>
    %127 = arith.mulf %122, %126 : vector<2x10xf32>
    %128 = vector.extract_strided_slice %10 {offsets = [6, 0], sizes = [2, 10], strides = [1, 1]} : vector<16x10xf32> to vector<2x10xf32>
    %cst_52 = arith.constant dense<0.000000e+00> : vector<2x10xf32>
    %129 = tpu.matmul %127, %5, %cst_52 {dimension_numbers = #tpu.dot_dimension_numbers<[1], [0], [0], [1], [0, 0, 1, 1], [], []>} : vector<2x10xf32>, vector<10x10xf32>, vector<2x10xf32> -> vector<2x10xf32>
    %130 = arith.addf %128, %129 : vector<2x10xf32>
    %131 = vector.extract_strided_slice %16 {offsets = [6, 0], sizes = [2, 10], strides = [1, 1]} : vector<16x10xf32> to vector<2x10xf32>
    %cst_53 = arith.constant dense<0.000000e+00> : vector<2x10xf32>
    %132 = tpu.matmul %127, %11, %cst_53 {dimension_numbers = #tpu.dot_dimension_numbers<[1], [0], [0], [1], [0, 0, 1, 1], [], []>} : vector<2x10xf32>, vector<10x10xf32>, vector<2x10xf32> -> vector<2x10xf32>
    %133 = arith.addf %131, %132 : vector<2x10xf32>
    %134 = vector.extract_strided_slice %22 {offsets = [6, 0], sizes = [2, 10], strides = [1, 1]} : vector<16x10xf32> to vector<2x10xf32>
    %cst_54 = arith.constant dense<0.000000e+00> : vector<2x10xf32>
    %135 = tpu.matmul %127, %17, %cst_54 {dimension_numbers = #tpu.dot_dimension_numbers<[1], [0], [0], [1], [0, 0, 1, 1], [], []>} : vector<2x10xf32>, vector<10x10xf32>, vector<2x10xf32> -> vector<2x10xf32>
    %136 = arith.addf %134, %135 : vector<2x10xf32>
    %137 = vector.extract_strided_slice %28 {offsets = [6, 0], sizes = [2, 10], strides = [1, 1]} : vector<16x10xf32> to vector<2x10xf32>
    %cst_55 = arith.constant dense<0.000000e+00> : vector<2x10xf32>
    %138 = tpu.matmul %127, %23, %cst_55 {dimension_numbers = #tpu.dot_dimension_numbers<[1], [0], [0], [1], [0, 0, 1, 1], [], []>} : vector<2x10xf32>, vector<10x10xf32>, vector<2x10xf32> -> vector<2x10xf32>
    %139 = arith.addf %137, %138 : vector<2x10xf32>
    %cst_56 = arith.constant 5.000000e-01 : f32
    %140 = vector.broadcast %cst_56 : f32 to vector<2x10xf32>
    %141 = arith.mulf %140, %130 : vector<2x10xf32>
    %142 = math.tanh %141 : vector<2x10xf32>
    %cst_57 = arith.constant 1.000000e+00 : f32
    %143 = vector.broadcast %cst_57 : f32 to vector<2x10xf32>
    %144 = arith.addf %142, %143 : vector<2x10xf32>
    %cst_58 = arith.constant 5.000000e-01 : f32
    %145 = vector.broadcast %cst_58 : f32 to vector<2x10xf32>
    %146 = arith.mulf %145, %144 : vector<2x10xf32>
    %cst_59 = arith.constant 5.000000e-01 : f32
    %147 = vector.broadcast %cst_59 : f32 to vector<2x10xf32>
    %148 = arith.mulf %147, %133 : vector<2x10xf32>
    %149 = math.tanh %148 : vector<2x10xf32>
    %cst_60 = arith.constant 1.000000e+00 : f32
    %150 = vector.broadcast %cst_60 : f32 to vector<2x10xf32>
    %151 = arith.addf %149, %150 : vector<2x10xf32>
    %cst_61 = arith.constant 5.000000e-01 : f32
    %152 = vector.broadcast %cst_61 : f32 to vector<2x10xf32>
    %153 = arith.mulf %152, %151 : vector<2x10xf32>
    %154 = math.tanh %136 : vector<2x10xf32>
    %cst_62 = arith.constant 5.000000e-01 : f32
    %155 = vector.broadcast %cst_62 : f32 to vector<2x10xf32>
    %156 = arith.mulf %155, %139 : vector<2x10xf32>
    %157 = math.tanh %156 : vector<2x10xf32>
    %cst_63 = arith.constant 1.000000e+00 : f32
    %158 = vector.broadcast %cst_63 : f32 to vector<2x10xf32>
    %159 = arith.addf %157, %158 : vector<2x10xf32>
    %cst_64 = arith.constant 5.000000e-01 : f32
    %160 = vector.broadcast %cst_64 : f32 to vector<2x10xf32>
    %161 = arith.mulf %160, %159 : vector<2x10xf32>
    %162 = arith.mulf %153, %125 : vector<2x10xf32>
    %163 = arith.mulf %146, %154 : vector<2x10xf32>
    %164 = arith.addf %162, %163 : vector<2x10xf32>
    %165 = math.tanh %164 : vector<2x10xf32>
    %166 = arith.mulf %161, %165 : vector<2x10xf32>
    %167 = vector.extract_strided_slice %10 {offsets = [8, 0], sizes = [2, 10], strides = [1, 1]} : vector<16x10xf32> to vector<2x10xf32>
    %cst_65 = arith.constant dense<0.000000e+00> : vector<2x10xf32>
    %168 = tpu.matmul %166, %5, %cst_65 {dimension_numbers = #tpu.dot_dimension_numbers<[1], [0], [0], [1], [0, 0, 1, 1], [], []>} : vector<2x10xf32>, vector<10x10xf32>, vector<2x10xf32> -> vector<2x10xf32>
    %169 = arith.addf %167, %168 : vector<2x10xf32>
    %170 = vector.extract_strided_slice %16 {offsets = [8, 0], sizes = [2, 10], strides = [1, 1]} : vector<16x10xf32> to vector<2x10xf32>
    %cst_66 = arith.constant dense<0.000000e+00> : vector<2x10xf32>
    %171 = tpu.matmul %166, %11, %cst_66 {dimension_numbers = #tpu.dot_dimension_numbers<[1], [0], [0], [1], [0, 0, 1, 1], [], []>} : vector<2x10xf32>, vector<10x10xf32>, vector<2x10xf32> -> vector<2x10xf32>
    %172 = arith.addf %170, %171 : vector<2x10xf32>
    %173 = vector.extract_strided_slice %22 {offsets = [8, 0], sizes = [2, 10], strides = [1, 1]} : vector<16x10xf32> to vector<2x10xf32>
    %cst_67 = arith.constant dense<0.000000e+00> : vector<2x10xf32>
    %174 = tpu.matmul %166, %17, %cst_67 {dimension_numbers = #tpu.dot_dimension_numbers<[1], [0], [0], [1], [0, 0, 1, 1], [], []>} : vector<2x10xf32>, vector<10x10xf32>, vector<2x10xf32> -> vector<2x10xf32>
    %175 = arith.addf %173, %174 : vector<2x10xf32>
    %176 = vector.extract_strided_slice %28 {offsets = [8, 0], sizes = [2, 10], strides = [1, 1]} : vector<16x10xf32> to vector<2x10xf32>
    %cst_68 = arith.constant dense<0.000000e+00> : vector<2x10xf32>
    %177 = tpu.matmul %166, %23, %cst_68 {dimension_numbers = #tpu.dot_dimension_numbers<[1], [0], [0], [1], [0, 0, 1, 1], [], []>} : vector<2x10xf32>, vector<10x10xf32>, vector<2x10xf32> -> vector<2x10xf32>
    %178 = arith.addf %176, %177 : vector<2x10xf32>
    %cst_69 = arith.constant 5.000000e-01 : f32
    %179 = vector.broadcast %cst_69 : f32 to vector<2x10xf32>
    %180 = arith.mulf %179, %169 : vector<2x10xf32>
    %181 = math.tanh %180 : vector<2x10xf32>
    %cst_70 = arith.constant 1.000000e+00 : f32
    %182 = vector.broadcast %cst_70 : f32 to vector<2x10xf32>
    %183 = arith.addf %181, %182 : vector<2x10xf32>
    %cst_71 = arith.constant 5.000000e-01 : f32
    %184 = vector.broadcast %cst_71 : f32 to vector<2x10xf32>
    %185 = arith.mulf %184, %183 : vector<2x10xf32>
    %cst_72 = arith.constant 5.000000e-01 : f32
    %186 = vector.broadcast %cst_72 : f32 to vector<2x10xf32>
    %187 = arith.mulf %186, %172 : vector<2x10xf32>
    %188 = math.tanh %187 : vector<2x10xf32>
    %cst_73 = arith.constant 1.000000e+00 : f32
    %189 = vector.broadcast %cst_73 : f32 to vector<2x10xf32>
    %190 = arith.addf %188, %189 : vector<2x10xf32>
    %cst_74 = arith.constant 5.000000e-01 : f32
    %191 = vector.broadcast %cst_74 : f32 to vector<2x10xf32>
    %192 = arith.mulf %191, %190 : vector<2x10xf32>
    %193 = math.tanh %175 : vector<2x10xf32>
    %cst_75 = arith.constant 5.000000e-01 : f32
    %194 = vector.broadcast %cst_75 : f32 to vector<2x10xf32>
    %195 = arith.mulf %194, %178 : vector<2x10xf32>
    %196 = math.tanh %195 : vector<2x10xf32>
    %cst_76 = arith.constant 1.000000e+00 : f32
    %197 = vector.broadcast %cst_76 : f32 to vector<2x10xf32>
    %198 = arith.addf %196, %197 : vector<2x10xf32>
    %cst_77 = arith.constant 5.000000e-01 : f32
    %199 = vector.broadcast %cst_77 : f32 to vector<2x10xf32>
    %200 = arith.mulf %199, %198 : vector<2x10xf32>
    %201 = arith.mulf %192, %164 : vector<2x10xf32>
    %202 = arith.mulf %185, %193 : vector<2x10xf32>
    %203 = arith.addf %201, %202 : vector<2x10xf32>
    %204 = math.tanh %203 : vector<2x10xf32>
    %205 = arith.mulf %200, %204 : vector<2x10xf32>
    %206 = vector.extract_strided_slice %10 {offsets = [10, 0], sizes = [2, 10], strides = [1, 1]} : vector<16x10xf32> to vector<2x10xf32>
    %cst_78 = arith.constant dense<0.000000e+00> : vector<2x10xf32>
    %207 = tpu.matmul %205, %5, %cst_78 {dimension_numbers = #tpu.dot_dimension_numbers<[1], [0], [0], [1], [0, 0, 1, 1], [], []>} : vector<2x10xf32>, vector<10x10xf32>, vector<2x10xf32> -> vector<2x10xf32>
    %208 = arith.addf %206, %207 : vector<2x10xf32>
    %209 = vector.extract_strided_slice %16 {offsets = [10, 0], sizes = [2, 10], strides = [1, 1]} : vector<16x10xf32> to vector<2x10xf32>
    %cst_79 = arith.constant dense<0.000000e+00> : vector<2x10xf32>
    %210 = tpu.matmul %205, %11, %cst_79 {dimension_numbers = #tpu.dot_dimension_numbers<[1], [0], [0], [1], [0, 0, 1, 1], [], []>} : vector<2x10xf32>, vector<10x10xf32>, vector<2x10xf32> -> vector<2x10xf32>
    %211 = arith.addf %209, %210 : vector<2x10xf32>
    %212 = vector.extract_strided_slice %22 {offsets = [10, 0], sizes = [2, 10], strides = [1, 1]} : vector<16x10xf32> to vector<2x10xf32>
    %cst_80 = arith.constant dense<0.000000e+00> : vector<2x10xf32>
    %213 = tpu.matmul %205, %17, %cst_80 {dimension_numbers = #tpu.dot_dimension_numbers<[1], [0], [0], [1], [0, 0, 1, 1], [], []>} : vector<2x10xf32>, vector<10x10xf32>, vector<2x10xf32> -> vector<2x10xf32>
    %214 = arith.addf %212, %213 : vector<2x10xf32>
    %215 = vector.extract_strided_slice %28 {offsets = [10, 0], sizes = [2, 10], strides = [1, 1]} : vector<16x10xf32> to vector<2x10xf32>
    %cst_81 = arith.constant dense<0.000000e+00> : vector<2x10xf32>
    %216 = tpu.matmul %205, %23, %cst_81 {dimension_numbers = #tpu.dot_dimension_numbers<[1], [0], [0], [1], [0, 0, 1, 1], [], []>} : vector<2x10xf32>, vector<10x10xf32>, vector<2x10xf32> -> vector<2x10xf32>
    %217 = arith.addf %215, %216 : vector<2x10xf32>
    %cst_82 = arith.constant 5.000000e-01 : f32
    %218 = vector.broadcast %cst_82 : f32 to vector<2x10xf32>
    %219 = arith.mulf %218, %208 : vector<2x10xf32>
    %220 = math.tanh %219 : vector<2x10xf32>
    %cst_83 = arith.constant 1.000000e+00 : f32
    %221 = vector.broadcast %cst_83 : f32 to vector<2x10xf32>
    %222 = arith.addf %220, %221 : vector<2x10xf32>
    %cst_84 = arith.constant 5.000000e-01 : f32
    %223 = vector.broadcast %cst_84 : f32 to vector<2x10xf32>
    %224 = arith.mulf %223, %222 : vector<2x10xf32>
    %cst_85 = arith.constant 5.000000e-01 : f32
    %225 = vector.broadcast %cst_85 : f32 to vector<2x10xf32>
    %226 = arith.mulf %225, %211 : vector<2x10xf32>
    %227 = math.tanh %226 : vector<2x10xf32>
    %cst_86 = arith.constant 1.000000e+00 : f32
    %228 = vector.broadcast %cst_86 : f32 to vector<2x10xf32>
    %229 = arith.addf %227, %228 : vector<2x10xf32>
    %cst_87 = arith.constant 5.000000e-01 : f32
    %230 = vector.broadcast %cst_87 : f32 to vector<2x10xf32>
    %231 = arith.mulf %230, %229 : vector<2x10xf32>
    %232 = math.tanh %214 : vector<2x10xf32>
    %cst_88 = arith.constant 5.000000e-01 : f32
    %233 = vector.broadcast %cst_88 : f32 to vector<2x10xf32>
    %234 = arith.mulf %233, %217 : vector<2x10xf32>
    %235 = math.tanh %234 : vector<2x10xf32>
    %cst_89 = arith.constant 1.000000e+00 : f32
    %236 = vector.broadcast %cst_89 : f32 to vector<2x10xf32>
    %237 = arith.addf %235, %236 : vector<2x10xf32>
    %cst_90 = arith.constant 5.000000e-01 : f32
    %238 = vector.broadcast %cst_90 : f32 to vector<2x10xf32>
    %239 = arith.mulf %238, %237 : vector<2x10xf32>
    %240 = arith.mulf %231, %203 : vector<2x10xf32>
    %241 = arith.mulf %224, %232 : vector<2x10xf32>
    %242 = arith.addf %240, %241 : vector<2x10xf32>
    %243 = math.tanh %242 : vector<2x10xf32>
    %244 = arith.mulf %239, %243 : vector<2x10xf32>
    %245 = vector.extract_strided_slice %10 {offsets = [12, 0], sizes = [2, 10], strides = [1, 1]} : vector<16x10xf32> to vector<2x10xf32>
    %cst_91 = arith.constant dense<0.000000e+00> : vector<2x10xf32>
    %246 = tpu.matmul %244, %5, %cst_91 {dimension_numbers = #tpu.dot_dimension_numbers<[1], [0], [0], [1], [0, 0, 1, 1], [], []>} : vector<2x10xf32>, vector<10x10xf32>, vector<2x10xf32> -> vector<2x10xf32>
    %247 = arith.addf %245, %246 : vector<2x10xf32>
    %248 = vector.extract_strided_slice %16 {offsets = [12, 0], sizes = [2, 10], strides = [1, 1]} : vector<16x10xf32> to vector<2x10xf32>
    %cst_92 = arith.constant dense<0.000000e+00> : vector<2x10xf32>
    %249 = tpu.matmul %244, %11, %cst_92 {dimension_numbers = #tpu.dot_dimension_numbers<[1], [0], [0], [1], [0, 0, 1, 1], [], []>} : vector<2x10xf32>, vector<10x10xf32>, vector<2x10xf32> -> vector<2x10xf32>
    %250 = arith.addf %248, %249 : vector<2x10xf32>
    %251 = vector.extract_strided_slice %22 {offsets = [12, 0], sizes = [2, 10], strides = [1, 1]} : vector<16x10xf32> to vector<2x10xf32>
    %cst_93 = arith.constant dense<0.000000e+00> : vector<2x10xf32>
    %252 = tpu.matmul %244, %17, %cst_93 {dimension_numbers = #tpu.dot_dimension_numbers<[1], [0], [0], [1], [0, 0, 1, 1], [], []>} : vector<2x10xf32>, vector<10x10xf32>, vector<2x10xf32> -> vector<2x10xf32>
    %253 = arith.addf %251, %252 : vector<2x10xf32>
    %254 = vector.extract_strided_slice %28 {offsets = [12, 0], sizes = [2, 10], strides = [1, 1]} : vector<16x10xf32> to vector<2x10xf32>
    %cst_94 = arith.constant dense<0.000000e+00> : vector<2x10xf32>
    %255 = tpu.matmul %244, %23, %cst_94 {dimension_numbers = #tpu.dot_dimension_numbers<[1], [0], [0], [1], [0, 0, 1, 1], [], []>} : vector<2x10xf32>, vector<10x10xf32>, vector<2x10xf32> -> vector<2x10xf32>
    %256 = arith.addf %254, %255 : vector<2x10xf32>
    %cst_95 = arith.constant 5.000000e-01 : f32
    %257 = vector.broadcast %cst_95 : f32 to vector<2x10xf32>
    %258 = arith.mulf %257, %247 : vector<2x10xf32>
    %259 = math.tanh %258 : vector<2x10xf32>
    %cst_96 = arith.constant 1.000000e+00 : f32
    %260 = vector.broadcast %cst_96 : f32 to vector<2x10xf32>
    %261 = arith.addf %259, %260 : vector<2x10xf32>
    %cst_97 = arith.constant 5.000000e-01 : f32
    %262 = vector.broadcast %cst_97 : f32 to vector<2x10xf32>
    %263 = arith.mulf %262, %261 : vector<2x10xf32>
    %cst_98 = arith.constant 5.000000e-01 : f32
    %264 = vector.broadcast %cst_98 : f32 to vector<2x10xf32>
    %265 = arith.mulf %264, %250 : vector<2x10xf32>
    %266 = math.tanh %265 : vector<2x10xf32>
    %cst_99 = arith.constant 1.000000e+00 : f32
    %267 = vector.broadcast %cst_99 : f32 to vector<2x10xf32>
    %268 = arith.addf %266, %267 : vector<2x10xf32>
    %cst_100 = arith.constant 5.000000e-01 : f32
    %269 = vector.broadcast %cst_100 : f32 to vector<2x10xf32>
    %270 = arith.mulf %269, %268 : vector<2x10xf32>
    %271 = math.tanh %253 : vector<2x10xf32>
    %cst_101 = arith.constant 5.000000e-01 : f32
    %272 = vector.broadcast %cst_101 : f32 to vector<2x10xf32>
    %273 = arith.mulf %272, %256 : vector<2x10xf32>
    %274 = math.tanh %273 : vector<2x10xf32>
    %cst_102 = arith.constant 1.000000e+00 : f32
    %275 = vector.broadcast %cst_102 : f32 to vector<2x10xf32>
    %276 = arith.addf %274, %275 : vector<2x10xf32>
    %cst_103 = arith.constant 5.000000e-01 : f32
    %277 = vector.broadcast %cst_103 : f32 to vector<2x10xf32>
    %278 = arith.mulf %277, %276 : vector<2x10xf32>
    %279 = arith.mulf %270, %242 : vector<2x10xf32>
    %280 = arith.mulf %263, %271 : vector<2x10xf32>
    %281 = arith.addf %279, %280 : vector<2x10xf32>
    %282 = math.tanh %281 : vector<2x10xf32>
    %283 = arith.mulf %278, %282 : vector<2x10xf32>
    %284 = vector.extract_strided_slice %10 {offsets = [14, 0], sizes = [2, 10], strides = [1, 1]} : vector<16x10xf32> to vector<2x10xf32>
    %cst_104 = arith.constant dense<0.000000e+00> : vector<2x10xf32>
    %285 = tpu.matmul %283, %5, %cst_104 {dimension_numbers = #tpu.dot_dimension_numbers<[1], [0], [0], [1], [0, 0, 1, 1], [], []>} : vector<2x10xf32>, vector<10x10xf32>, vector<2x10xf32> -> vector<2x10xf32>
    %286 = arith.addf %284, %285 : vector<2x10xf32>
    %287 = vector.extract_strided_slice %16 {offsets = [14, 0], sizes = [2, 10], strides = [1, 1]} : vector<16x10xf32> to vector<2x10xf32>
    %cst_105 = arith.constant dense<0.000000e+00> : vector<2x10xf32>
    %288 = tpu.matmul %283, %11, %cst_105 {dimension_numbers = #tpu.dot_dimension_numbers<[1], [0], [0], [1], [0, 0, 1, 1], [], []>} : vector<2x10xf32>, vector<10x10xf32>, vector<2x10xf32> -> vector<2x10xf32>
    %289 = arith.addf %287, %288 : vector<2x10xf32>
    %290 = vector.extract_strided_slice %22 {offsets = [14, 0], sizes = [2, 10], strides = [1, 1]} : vector<16x10xf32> to vector<2x10xf32>
    %cst_106 = arith.constant dense<0.000000e+00> : vector<2x10xf32>
    %291 = tpu.matmul %283, %17, %cst_106 {dimension_numbers = #tpu.dot_dimension_numbers<[1], [0], [0], [1], [0, 0, 1, 1], [], []>} : vector<2x10xf32>, vector<10x10xf32>, vector<2x10xf32> -> vector<2x10xf32>
    %292 = arith.addf %290, %291 : vector<2x10xf32>
    %293 = vector.extract_strided_slice %28 {offsets = [14, 0], sizes = [2, 10], strides = [1, 1]} : vector<16x10xf32> to vector<2x10xf32>
    %cst_107 = arith.constant dense<0.000000e+00> : vector<2x10xf32>
    %294 = tpu.matmul %283, %23, %cst_107 {dimension_numbers = #tpu.dot_dimension_numbers<[1], [0], [0], [1], [0, 0, 1, 1], [], []>} : vector<2x10xf32>, vector<10x10xf32>, vector<2x10xf32> -> vector<2x10xf32>
    %295 = arith.addf %293, %294 : vector<2x10xf32>
    %cst_108 = arith.constant 5.000000e-01 : f32
    %296 = vector.broadcast %cst_108 : f32 to vector<2x10xf32>
    %297 = arith.mulf %296, %286 : vector<2x10xf32>
    %298 = math.tanh %297 : vector<2x10xf32>
    %cst_109 = arith.constant 1.000000e+00 : f32
    %299 = vector.broadcast %cst_109 : f32 to vector<2x10xf32>
    %300 = arith.addf %298, %299 : vector<2x10xf32>
    %cst_110 = arith.constant 5.000000e-01 : f32
    %301 = vector.broadcast %cst_110 : f32 to vector<2x10xf32>
    %302 = arith.mulf %301, %300 : vector<2x10xf32>
    %cst_111 = arith.constant 5.000000e-01 : f32
    %303 = vector.broadcast %cst_111 : f32 to vector<2x10xf32>
    %304 = arith.mulf %303, %289 : vector<2x10xf32>
    %305 = math.tanh %304 : vector<2x10xf32>
    %cst_112 = arith.constant 1.000000e+00 : f32
    %306 = vector.broadcast %cst_112 : f32 to vector<2x10xf32>
    %307 = arith.addf %305, %306 : vector<2x10xf32>
    %cst_113 = arith.constant 5.000000e-01 : f32
    %308 = vector.broadcast %cst_113 : f32 to vector<2x10xf32>
    %309 = arith.mulf %308, %307 : vector<2x10xf32>
    %310 = math.tanh %292 : vector<2x10xf32>
    %cst_114 = arith.constant 5.000000e-01 : f32
    %311 = vector.broadcast %cst_114 : f32 to vector<2x10xf32>
    %312 = arith.mulf %311, %295 : vector<2x10xf32>
    %313 = math.tanh %312 : vector<2x10xf32>
    %cst_115 = arith.constant 1.000000e+00 : f32
    %314 = vector.broadcast %cst_115 : f32 to vector<2x10xf32>
    %315 = arith.addf %313, %314 : vector<2x10xf32>
    %cst_116 = arith.constant 5.000000e-01 : f32
    %316 = vector.broadcast %cst_116 : f32 to vector<2x10xf32>
    %317 = arith.mulf %316, %315 : vector<2x10xf32>
    %318 = arith.mulf %309, %281 : vector<2x10xf32>
    %319 = arith.mulf %302, %310 : vector<2x10xf32>
    %320 = arith.addf %318, %319 : vector<2x10xf32>
    %321 = math.tanh %320 : vector<2x10xf32>
    %322 = arith.mulf %317, %321 : vector<2x10xf32>
    %c72 = arith.constant 72 : index
    %c0_117 = arith.constant 0 : index
    %323 = vector.load %arg1[%c72, %c0_117] : memref<88x128xf32, #tpu.memory_space<vmem>>, vector<10x3xf32>
    %c82 = arith.constant 82 : index
    %c0_118 = arith.constant 0 : index
    %324 = vector.load %arg1[%c82, %c0_118] : memref<88x128xf32, #tpu.memory_space<vmem>>, vector<1x3xf32>
    %cst_119 = arith.constant dense<0.000000e+00> : vector<2x3xf32>
    %325 = tpu.matmul %322, %323, %cst_119 {dimension_numbers = #tpu.dot_dimension_numbers<[1], [0], [0], [1], [0, 0, 1, 1], [], []>} : vector<2x10xf32>, vector<10x3xf32>, vector<2x3xf32> -> vector<2x3xf32>
    %326 = vector.broadcast %324 : vector<1x3xf32> to vector<2x3xf32>
    %327 = arith.addf %325, %326 : vector<2x3xf32>
    %c0_120 = arith.constant 0 : index
    %c0_121 = arith.constant 0 : index
    %328 = vector.load %arg2[%c0_120, %c0_121] : memref<2x3xf32, #tpu.memory_space<vmem>>, vector<2x3xf32>
    tpu.vector_store %arg2[%c0_120, %c0_121], %327 {strides = array<i32>} : memref<2x3xf32, #tpu.memory_space<vmem>>, vector<2x3xf32>,
    return
  }
}

</mosaic_0001>

<bundles_post_ra>
// kernel: tpu_custom_call.1
= control target key start
LH: loop header
LB: loop body
LE: loop exit
PB: predicated region body
PF: predicated region fallthrough
CT: control target
= control target key end

     0   :  { %7 = vsyncpa [#allocation3], 0  ;;  %s1556_s0 = inlined_call_operand.vmem [shape: f32[16,4], index: 0, kind: input, shape index: {}]   ;;  %s1557_s1 = inlined_call_operand.hbm [shape: f32[88,128], index: 1, kind: input, shape index: {}]   ;;  %s1558_s2 = inlined_call_operand.hbm [shape: f32[2,3], index: 2, kind: output, shape index: {}]  }
   0x1   :  { %8 = vsyncpa [#allocation4], 0  ;;  %s15_s11 = sshll.u32 %s1557_s1, 4  ;;  %s1320_s12 = smov [#allocation2]   ;;  %s16_s11 = int_to_ptr.hbm [resolvable:$true] %s15_s11 }
   0x2   :  { %s17_s13 = sshll.u32 %s1320_s12, 4  ;;  %s1321_s14 = smov 128   ;;  %s18_s13 = int_to_ptr.vmem [resolvable:$true] %s17_s13 }
   0x3   :  { %s1322_s15 = smov 8  }
   0x4   :  { %23 = dma.hbm_to_vmem [thread:$0]  %s16_s11, 1408, %s18_s13, [#allocation3], %s1321_s14, %s1321_s14, %s1322_s15  }
   0x5   :  { %1316 = dma.done.wait [#allocation3], 1408  }
   0x6   :  { %1317 = vsyncadd [#allocation3], 4294965888  ;;  %vm38_vm0 = vcmask 1043456   ;;  %vm31_vm1 = vcmask 31744   ;;  %v28_v0 = vld [vmem:[#allocation2] sm:$0xf] }
   0x7   :  { %v29_v1 = vld [vmem:[%s1556_s0] sm:$0xff]  ;;  %vm79_vm2 = vcmask 1040384   ;;  %1108 = vmatpush.msk.msra.mxu0 %vm38_vm0, %v28_v0  ;;  %v30_v3 = vld [vmem:[%s1556_s0 + $0x8] sm:$0xff]  ;;  %v69_v4 = vld [vmem:[#allocation2 + $0x12] sm:$0x1]  ;;  %vm72_vm3 = vcmask 7168  }
   0x8   :  { %v170_v2 = vld [vmem:[#allocation2 + $0x42] sm:$0x1]  ;;  %1109 = vmatmul.msk.f32.vlgmr.msra.gmra.mxu0 %vm31_vm1, %v29_v1  ;;  %v139_v6 = vld [vmem:[#allocation2 + $0x32] sm:$0x1]  ;;  %1111 = vmatpush.msk.msra.mxu1 %vm79_vm2, %v69_v4  ;;  %v1348_v11 = vld [vmem:[#allocation2 + $0x20] sm:$0x3] }
   0x9   :  { %1120 = vmatpush.msk.msrb.mxu0 %vm79_vm2, %v170_v2  ;;  %v108_v5 = vld [vmem:[#allocation2 + $0x22] sm:$0x1]  ;;  %1117 = vmatpush.msk.msra.mxu3 %vm79_vm2, %v139_v6  ;;  %vm215_vm4 = vcmask 1041408   ;;  %v1350_v12 = vld [vmem:[#allocation2 + $0x10] sm:$0x3]  ;;  %v1352_v13 = vld [vmem:[#allocation2 + $0x18] sm:$0xff] }
   0xa   :  { %1114 = vmatpush.msk.msra.mxu2 %vm79_vm2, %v108_v5  ;;  %1123 = vmatpush.msk.msrb.mxu1 %vm215_vm4, %v1350_v12  ;;  %v1358_v14 = vld [vmem:[#allocation2 + $0x30] sm:$0x3]  ;;  %v1360_v15 = vld [vmem:[#allocation2 + $0x8] sm:$0xff]  ;;  %v1381_v17 = vld [vmem:[#allocation2 + $0x13] ss:$0 sm:$0xff]  ;;  %vm211_vm5 = vcmask 80896  }
   0xb   :  { %v1362_v16 = vld [vmem:[#allocation2 + $0x28] sm:$0xff]  ;;  %1127 = vmatpush.msk.msrb.mxu3 %vm215_vm4, %v1358_v14  ;;  %1135 = vmatpush.msk.msra.mxu0 %vm215_vm4, %v1358_v14  ;;  %v1383_v18 = vld [vmem:[#allocation2 + $0x40] sm:$0x3]  ;;  %v1385_v19 = vld [vmem:[#allocation2 + $0x38] sm:$0xff]  ;;  %s1323_s0 = smov [#allocation5]   ;;  %s1098_s22 = sshll.u32 %s1558_s2, 4  ;;  %s1099_s22 = int_to_ptr.hbm [resolvable:$true] %s1098_s22 }
   0xc   :  { %1125 = vmatpush.msk.msrb.mxu2 %vm215_vm4, %v1348_v11  ;;  %234 = vmatpush.msrb.mxu1 %v1360_v15  ;;  %v1389_v20 = vld [vmem:[#allocation2 + $0x43] ss:$0 sm:$0xff]  ;;  %v1399_v26 = vld [vmem:[#allocation2 + $0x33] ss:$0 sm:$0xff]  ;;  %s1096_s19 = sshll.u32 %s1323_s0, 4  ;;  %vm1089_vm6 = vcmask 17408   ;;  %s1097_s19 = int_to_ptr.vmem [resolvable:$true] %s1096_s19 }
   0xd   :  { %288 = vmatpush.msrb.mxu3 %v1362_v16  ;;  %412 = vmatpush.msra.mxu0 %v1362_v16  ;;  %v1428_v46 = vld [vmem:[#allocation2 + $0x23] ss:$0 sm:$0xff] }
   0xe   :  { %261 = vmatpush.msrb.mxu2 %v1352_v13 }
  0x10   :  { %1110 = vmatmul.msk.f32.gmra.mxu0 %vm31_vm1, %v30_v3 }
  0x85   :  { %v59_v7 = vpop.f32.mrf.mxu0 }
  0x86   :  { %v65_v8 = vmax.f32 %v59_v7, 0.0 }
  0x88   :  { %1112 = vmatmul.msk.f32.vlgmr.msra.gmra.mxu1 %vm72_vm3, %v65_v8  ;;  %1115 = vmatmul.msk.f32.vlgmr.msra.gmra.mxu2 %vm72_vm3, %v65_v8 }
  0x89   :  { %1118 = vmatmul.msk.f32.vlgmr.msra.gmra.mxu3 %vm72_vm3, %v65_v8  ;;  %1121 = vmatmul.msk.f32.vlgmr.msrb.gmra.mxu0 %vm72_vm3, %v65_v8 }
  0x8a   :  { %1131 = vmatpush.msk.msra.mxu2 %vm215_vm4, %v1350_v12  ;;  %1133 = vmatpush.msk.msra.mxu3 %vm215_vm4, %v1348_v11 }
  0x8b   :  { %1143 = vmatpush.msk.msrb.mxu0 %vm215_vm4, %v1358_v14  ;;  %1129 = vmatpush.msk.msra.mxu1 %vm215_vm4, %v1383_v18 }
  0x8c   :  { %364 = vmatpush.msra.mxu2 %v1360_v15  ;;  %388 = vmatpush.msra.mxu3 %v1352_v13 }
  0x8d   :  { %v62_v9 = vpop.f32.mrf.mxu0  ;;  %533 = vmatpush.msrb.mxu0 %v1362_v16  ;;  %315 = vmatpush.msra.mxu1 %v1385_v19 }
  0x8e   :  { %v66_v10 = vmax.f32 %v62_v9, 0.0 }
  0x90   :  { %1113 = vmatmul.msk.f32.gmra.mxu1 %vm72_vm3, %v66_v10  ;;  %1116 = vmatmul.msk.f32.gmra.mxu2 %vm72_vm3, %v66_v10 }
  0x91   :  { %1119 = vmatmul.msk.f32.gmra.mxu3 %vm72_vm3, %v66_v10  ;;  %1122 = vmatmul.msk.f32.gmra.mxu0 %vm72_vm3, %v66_v10 }
 0x105   :  { %v100_v21 = vpop.f32.mrf.mxu1 }
 0x106   :  { %v1393_v22 = vadd.f32 %v1381_v17, %v100_v21  ;;  %v193_v23 = vpop.f32.mrf.mxu0 }
 0x107   :  { %v1397_v25 = vadd.f32 %v1389_v20, %v193_v23 }
 0x108   :  { %v199_v24 = vmul.f32 0.5, %v1393_v22 }
 0x109   :  { %v204_v27 = vmul.f32 0.5, %v1397_v25 }
 0x10a   :  { %1190 = vtanh.f32 %v199_v24 }
 0x10b   :  { %v131_v40 = vpop.f32.mrf.mxu2 }
 0x10c   :  { %v162_v28 = vpop.f32.mrf.mxu3  ;;  %v1432_v50 = vadd.f32 %v1428_v46, %v131_v40 }
 0x10d   :  { %v1403_v29 = vadd.f32 %v1399_v26, %v162_v28  ;;  %v1422_v41 = vpop.f32.mrf.mxu1 }
 0x10f   :  { %1192 = vtanh.f32 %v1403_v29 }
 0x110   :  { %v1191_v30 = vpop.eup %1190  ;;  %1194 = vtanh.f32 %v204_v27  ;;  %v1453_v27 = vpop.f32.mrf.mxu0 }
 0x111   :  { %v201_v31 = vadd.f32 1.0, %v1191_v30 }
 0x113   :  { %v202_v32 = vmul.f32 0.5, %v201_v31  ;;  %v1424_v42 = vpop.f32.mrf.mxu2 }
 0x114   :  { %v1426_v43 = vpop.f32.mrf.mxu3 }
 0x115   :  { %v1193_v33 = vpop.eup %1192 }
 0x116   :  { %v1195_v34 = vpop.eup %1194  ;;  %v208_v35 = vmul.f32 %v1193_v33, %v202_v32 }
 0x117   :  { %v206_v36 = vadd.f32 1.0, %v1195_v34 }
 0x118   :  { %1196 = vtanh.f32 %v208_v35  ;;  %v338_v4 = vrot.slane %v208_v35, 6 }
 0x119   :  { %v207_v37 = vmul.f32 0.5, %v206_v36 }
 0x11e   :  { %v1197_v38 = vpop.eup %1196 }
 0x11f   :  { %v210_v39 = vmul.f32 %v1197_v38, %v207_v37 }
 0x121   :  { %1124 = vmatmul.msk.f32.vlgmr.msrb.gmra.mxu1 %vm211_vm5, %v210_v39  ;;  %1126 = vmatmul.msk.f32.vlgmr.msrb.gmra.mxu2 %vm211_vm5, %v210_v39 }
 0x122   :  { %1128 = vmatmul.msk.f32.vlgmr.msrb.gmra.mxu3 %vm211_vm5, %v210_v39  ;;  %1137 = vmatpush.msk.msrb.mxu1 %vm215_vm4, %v1383_v18 }
 0x123   :  { %1139 = vmatpush.msk.msrb.mxu2 %vm215_vm4, %v1350_v12  ;;  %1141 = vmatpush.msk.msrb.mxu3 %vm215_vm4, %v1348_v11 }
 0x124   :  { %436 = vmatpush.msrb.mxu1 %v1385_v19 }
 0x125   :  { %485 = vmatpush.msrb.mxu2 %v1360_v15  ;;  %509 = vmatpush.msrb.mxu3 %v1352_v13 }
 0x129   :  { %1130 = vmatmul.msk.f32.vlgmr.msra.gmra.mxu1 %vm211_vm5, %v210_v39 }
 0x12a   :  { %1145 = vmatpush.msk.msra.mxu1 %vm215_vm4, %v1383_v18 }
 0x12c   :  { %557 = vmatpush.msra.mxu1 %v1385_v19 }
 0x19e   :  { %v236_v44 = vpop.f32.mrf.mxu1 }
 0x19f   :  { %v240_v45 = vrot.slane %v236_v44, 6 }
 0x1a1   :  { %v242_v47 = vadd.f32 %v240_v45, %v1393_v22 }
 0x1a3   :  { %v324_v48 = vmul.f32 0.5, %v242_v47 }
 0x1a4   :  { %v263_v49 = vpop.f32.mrf.mxu2 }
 0x1a5   :  { %1198 = vtanh.f32 %v324_v48  ;;  %v267_v51 = vrot.slane %v263_v49, 6  ;;  %v290_v52 = vpop.f32.mrf.mxu3 }
 0x1a6   :  { %v294_v53 = vrot.slane %v290_v52, 6  ;;  %v317_v54 = vpop.f32.mrf.mxu1 }
 0x1a7   :  { %v269_v55 = vadd.f32 %v267_v51, %v1432_v50  ;;  %v321_v56 = vrot.slane %v317_v54, 6 }
 0x1a8   :  { %v296_v58 = vadd.f32 %v294_v53, %v1403_v29 }
 0x1a9   :  { %v328_v57 = vmul.f32 0.5, %v269_v55  ;;  %v323_v59 = vadd.f32 %v321_v56, %v1397_v25 }
 0x1ab   :  { %v1199_v60 = vpop.eup %1198  ;;  %1200 = vtanh.f32 %v328_v57  ;;  %v333_v62 = vmul.f32 0.5, %v323_v59 }
 0x1ac   :  { %1202 = vtanh.f32 %v296_v58  ;;  %v326_v61 = vadd.f32 1.0, %v1199_v60 }
 0x1ad   :  { %1204 = vtanh.f32 %v333_v62 }
 0x1ae   :  { %v327_v0 = vmul.f32 0.5, %v326_v61 }
 0x1b1   :  { %v1201_v63 = vpop.eup %1200 }
 0x1b2   :  { %v330_v1 = vadd.f32 1.0, %v1201_v63  ;;  %v1203_v2 = vpop.eup %1202 }
 0x1b3   :  { %v341_v6 = vmul.f32 %v1203_v2, %v327_v0  ;;  %v1205_v7 = vpop.eup %1204 }
 0x1b4   :  { %v331_v3 = vmul.f32 0.5, %v330_v1  ;;  %v335_v9 = vadd.f32 1.0, %v1205_v7 }
 0x1b6   :  { %v340_v5 = vmul.f32 %v338_v4, %v331_v3  ;;  %v336_v10 = vmul.f32 0.5, %v335_v9 }
 0x1b8   :  { %v342_v8 = vadd.f32 %v341_v6, %v340_v5 }
 0x1ba   :  { %1206 = vtanh.f32 %v342_v8  ;;  %v459_v56 = vrot.slane %v342_v8, 6 }
 0x1c0   :  { %v1207_v21 = vpop.eup %1206 }
 0x1c1   :  { %v344_v23 = vmul.f32 %v1207_v21, %v336_v10 }
 0x1c3   :  { %v346_v24 = vrot.slane %v344_v23, 2 }
 0x1c5   :  { %1132 = vmatmul.msk.f32.vlgmr.msra.gmra.mxu2 %vm211_vm5, %v346_v24  ;;  %1134 = vmatmul.msk.f32.vlgmr.msra.gmra.mxu3 %vm211_vm5, %v346_v24 }
 0x1c6   :  { %1136 = vmatmul.msk.f32.vlgmr.msra.gmra.mxu0 %vm211_vm5, %v346_v24  ;;  %1138 = vmatmul.msk.f32.vlgmr.msrb.gmra.mxu1 %vm211_vm5, %v346_v24 }
 0x1c7   :  { %1147 = vmatpush.msk.msra.mxu2 %vm215_vm4, %v1350_v12  ;;  %1149 = vmatpush.msk.msra.mxu3 %vm215_vm4, %v1348_v11 }
 0x1c8   :  { %1151 = vmatpush.msk.msra.mxu0 %vm215_vm4, %v1358_v14  ;;  %1153 = vmatpush.msk.msrb.mxu1 %vm215_vm4, %v1383_v18 }
 0x1c9   :  { %606 = vmatpush.msra.mxu2 %v1360_v15  ;;  %627 = vmatpush.msra.mxu3 %v1352_v13 }
 0x1ca   :  { %648 = vmatpush.msra.mxu0 %v1362_v16  ;;  %669 = vmatpush.msrb.mxu1 %v1385_v19 }
 0x243   :  { %v414_v28 = vpop.f32.mrf.mxu0  ;;  %v438_v30 = vpop.f32.mrf.mxu1 }
 0x244   :  { %v418_v35 = vrot.slane %v414_v28, 4  ;;  %v442_v36 = vrot.slane %v438_v30, 4 }
 0x246   :  { %v420_v44 = vadd.f32 %v418_v35, %v1403_v29  ;;  %v444_v45 = vadd.f32 %v442_v36, %v1397_v25 }
 0x248   :  { %v366_v31 = vpop.f32.mrf.mxu2  ;;  %v390_v32 = vpop.f32.mrf.mxu3  ;;  %v454_v47 = vmul.f32 0.5, %v444_v45 }
 0x249   :  { %v370_v33 = vrot.slane %v366_v31, 4  ;;  %v394_v34 = vrot.slane %v390_v32, 4 }
 0x24b   :  { %v372_v37 = vadd.f32 %v370_v33, %v1393_v22  ;;  %v396_v38 = vadd.f32 %v394_v34, %v1432_v50 }
 0x24d   :  { %v445_v39 = vmul.f32 0.5, %v372_v37  ;;  %v449_v40 = vmul.f32 0.5, %v396_v38 }
 0x24f   :  { %1208 = vtanh.f32 %v445_v39 }
 0x250   :  { %1210 = vtanh.f32 %v449_v40 }
 0x251   :  { %1212 = vtanh.f32 %v420_v44 }
 0x252   :  { %1214 = vtanh.f32 %v454_v47 }
 0x255   :  { %v1209_v48 = vpop.eup %1208 }
 0x256   :  { %v1211_v49 = vpop.eup %1210  ;;  %v447_v51 = vadd.f32 1.0, %v1209_v48 }
 0x257   :  { %v451_v52 = vadd.f32 1.0, %v1211_v49  ;;  %v1213_v54 = vpop.eup %1212  ;;  %v1497_v49 = vadd.f32 %v1381_v17, %v1422_v41  ;;  %v1511_v17 = vadd.f32 %v1399_v26, %v1426_v43 }
 0x258   :  { %v448_v53 = vmul.f32 0.5, %v447_v51  ;;  %v1215_v59 = vpop.eup %1214  ;;  %v1501_v51 = vadd.f32 %v1428_v46, %v1424_v42 }
 0x259   :  { %v452_v55 = vmul.f32 0.5, %v451_v52  ;;  %v456_v61 = vadd.f32 1.0, %v1215_v59 }
 0x25a   :  { %v462_v57 = vmul.f32 %v1213_v54, %v448_v53 }
 0x25b   :  { %v461_v58 = vmul.f32 %v459_v56, %v452_v55  ;;  %v457_v62 = vmul.f32 0.5, %v456_v61 }
 0x25d   :  { %v463_v60 = vadd.f32 %v462_v57, %v461_v58  ;;  %v1507_v58 = vadd.f32 %v1389_v20, %v1453_v27 }
 0x25f   :  { %1216 = vtanh.f32 %v463_v60  ;;  %v580_v38 = vrot.slane %v463_v60, 6 }
 0x265   :  { %v1217_v63 = vpop.eup %1216 }
 0x266   :  { %v465_v0 = vmul.f32 %v1217_v63, %v457_v62 }
 0x268   :  { %v467_v1 = vrot.slane %v465_v0, 4 }
 0x26a   :  { %1140 = vmatmul.msk.f32.vlgmr.msrb.gmra.mxu2 %vm211_vm5, %v467_v1  ;;  %1142 = vmatmul.msk.f32.vlgmr.msrb.gmra.mxu3 %vm211_vm5, %v467_v1 }
 0x26b   :  { %1144 = vmatmul.msk.f32.vlgmr.msrb.gmra.mxu0 %vm211_vm5, %v467_v1  ;;  %1146 = vmatmul.msk.f32.vlgmr.msra.gmra.mxu1 %vm211_vm5, %v467_v1 }
 0x26c   :  { %1155 = vmatpush.msk.msrb.mxu2 %vm215_vm4, %v1350_v12  ;;  %1157 = vmatpush.msk.msrb.mxu3 %vm215_vm4, %v1348_v11 }
 0x26d   :  { %1159 = vmatpush.msk.msrb.mxu0 %vm215_vm4, %v1358_v14  ;;  %1161 = vmatpush.msk.msra.mxu1 %vm215_vm4, %v1383_v18 }
 0x26e   :  { %714 = vmatpush.msrb.mxu2 %v1360_v15  ;;  %738 = vmatpush.msrb.mxu3 %v1352_v13 }
 0x26f   :  { %762 = vmatpush.msrb.mxu0 %v1362_v16  ;;  %786 = vmatpush.msra.mxu1 %v1385_v19 }
 0x2e8   :  { %v535_v2 = vpop.f32.mrf.mxu0  ;;  %v559_v3 = vpop.f32.mrf.mxu1 }
 0x2e9   :  { %v539_v8 = vrot.slane %v535_v2, 2  ;;  %v563_v9 = vrot.slane %v559_v3, 2 }
 0x2eb   :  { %v541_v28 = vadd.f32 %v539_v8, %v1403_v29  ;;  %v565_v30 = vadd.f32 %v563_v9, %v1397_v25 }
 0x2ed   :  { %v487_v4 = vpop.f32.mrf.mxu2  ;;  %v511_v5 = vpop.f32.mrf.mxu3  ;;  %v575_v31 = vmul.f32 0.5, %v565_v30 }
 0x2ee   :  { %v491_v6 = vrot.slane %v487_v4, 2  ;;  %v515_v7 = vrot.slane %v511_v5, 2 }
 0x2f0   :  { %v493_v10 = vadd.f32 %v491_v6, %v1393_v22  ;;  %v517_v21 = vadd.f32 %v515_v7, %v1432_v50 }
 0x2f2   :  { %v566_v23 = vmul.f32 0.5, %v493_v10  ;;  %v570_v24 = vmul.f32 0.5, %v517_v21 }
 0x2f4   :  { %1218 = vtanh.f32 %v566_v23 }
 0x2f5   :  { %1220 = vtanh.f32 %v570_v24 }
 0x2f6   :  { %1222 = vtanh.f32 %v541_v28 }
 0x2f7   :  { %1224 = vtanh.f32 %v575_v31 }
 0x2fa   :  { %v1219_v32 = vpop.eup %1218 }
 0x2fb   :  { %v1221_v33 = vpop.eup %1220  ;;  %v568_v34 = vadd.f32 1.0, %v1219_v32 }
 0x2fc   :  { %v572_v35 = vadd.f32 1.0, %v1221_v33  ;;  %v1223_v37 = vpop.eup %1222 }
 0x2fd   :  { %v569_v36 = vmul.f32 0.5, %v568_v34  ;;  %v1225_v40 = vpop.eup %1224 }
 0x2fe   :  { %v573_v22 = vmul.f32 0.5, %v572_v35  ;;  %v577_v29 = vadd.f32 1.0, %v1225_v40 }
 0x2ff   :  { %v583_v50 = vmul.f32 %v1223_v37, %v569_v36 }
 0x300   :  { %v582_v39 = vmul.f32 %v580_v38, %v573_v22  ;;  %v578_v25 = vmul.f32 0.5, %v577_v29 }
 0x302   :  { %v584_v44 = vadd.f32 %v583_v50, %v582_v39 }
 0x304   :  { %1226 = vtanh.f32 %v584_v44  ;;  %v689_v26 = vrot.slane %v584_v44, 6 }
 0x30a   :  { %v1227_v45 = vpop.eup %1226 }
 0x30b   :  { %v586_v47 = vmul.f32 %v1227_v45, %v578_v25 }
 0x30d   :  { %v588_v48 = vrot.slane %v586_v47, 6 }
 0x30f   :  { %1148 = vmatmul.msk.f32.vlgmr.msra.gmra.mxu2 %vm211_vm5, %v588_v48  ;;  %1150 = vmatmul.msk.f32.vlgmr.msra.gmra.mxu3 %vm211_vm5, %v588_v48 }
 0x310   :  { %1152 = vmatmul.msk.f32.vlgmr.msra.gmra.mxu0 %vm211_vm5, %v588_v48  ;;  %1154 = vmatmul.msk.f32.vlgmr.msrb.gmra.mxu1 %vm211_vm5, %v588_v48 }
 0x311   :  { %1163 = vmatpush.msk.msra.mxu2 %vm215_vm4, %v1350_v12  ;;  %1165 = vmatpush.msk.msra.mxu3 %vm215_vm4, %v1348_v11 }
 0x312   :  { %1167 = vmatpush.msk.msra.mxu0 %vm215_vm4, %v1358_v14  ;;  %1169 = vmatpush.msk.msrb.mxu1 %vm215_vm4, %v1383_v18 }
 0x313   :  { %835 = vmatpush.msra.mxu2 %v1360_v15  ;;  %859 = vmatpush.msra.mxu3 %v1352_v13 }
 0x314   :  { %883 = vmatpush.msra.mxu0 %v1362_v16  ;;  %907 = vmatpush.msrb.mxu1 %v1385_v19 }
 0x38d   :  { %v650_v56 = vpop.f32.mrf.mxu0  ;;  %v671_v57 = vpop.f32.mrf.mxu1 }
 0x38e   :  { %v653_v42 = vadd.f32 %v650_v56, %v1511_v17  ;;  %v674_v46 = vadd.f32 %v671_v57, %v1507_v58 }
 0x390   :  { %v684_v60 = vmul.f32 0.5, %v674_v46 }
 0x392   :  { %v608_v52 = vpop.f32.mrf.mxu2  ;;  %v629_v53 = vpop.f32.mrf.mxu3 }
 0x393   :  { %v611_v54 = vadd.f32 %v608_v52, %v1497_v49  ;;  %v632_v55 = vadd.f32 %v629_v53, %v1501_v51 }
 0x395   :  { %v675_v41 = vmul.f32 0.5, %v611_v54  ;;  %v679_v59 = vmul.f32 0.5, %v632_v55 }
 0x397   :  { %1228 = vtanh.f32 %v675_v41 }
 0x398   :  { %1230 = vtanh.f32 %v679_v59 }
 0x399   :  { %1232 = vtanh.f32 %v653_v42 }
 0x39a   :  { %1234 = vtanh.f32 %v684_v60 }
 0x39d   :  { %v1229_v61 = vpop.eup %1228 }
 0x39e   :  { %v1231_v62 = vpop.eup %1230  ;;  %v677_v63 = vadd.f32 1.0, %v1229_v61 }
 0x39f   :  { %v681_v20 = vadd.f32 1.0, %v1231_v62  ;;  %v1233_v0 = vpop.eup %1232 }
 0x3a0   :  { %v678_v27 = vmul.f32 0.5, %v677_v63  ;;  %v1235_v3 = vpop.eup %1234 }
 0x3a1   :  { %v682_v1 = vmul.f32 0.5, %v681_v20  ;;  %v686_v5 = vadd.f32 1.0, %v1235_v3 }
 0x3a2   :  { %v692_v43 = vmul.f32 %v1233_v0, %v678_v27 }
 0x3a3   :  { %v691_v2 = vmul.f32 %v689_v26, %v682_v1  ;;  %v687_v6 = vmul.f32 0.5, %v686_v5 }
 0x3a5   :  { %v693_v4 = vadd.f32 %v692_v43, %v691_v2 }
 0x3a7   :  { %1236 = vtanh.f32 %v693_v4  ;;  %v809_v22 = vrot.slane %v693_v4, 6 }
 0x3ad   :  { %v1237_v7 = vpop.eup %1236 }
 0x3ae   :  { %v695_v8 = vmul.f32 %v1237_v7, %v687_v6 }
 0x3b0   :  { %1156 = vmatmul.msk.f32.vlgmr.msrb.gmra.mxu2 %vm211_vm5, %v695_v8  ;;  %1158 = vmatmul.msk.f32.vlgmr.msrb.gmra.mxu3 %vm211_vm5, %v695_v8 }
 0x3b1   :  { %1160 = vmatmul.msk.f32.vlgmr.msrb.gmra.mxu0 %vm211_vm5, %v695_v8  ;;  %1162 = vmatmul.msk.f32.vlgmr.msra.gmra.mxu1 %vm211_vm5, %v695_v8 }
 0x3b2   :  { %1171 = vmatpush.msk.msrb.mxu2 %vm215_vm4, %v1350_v12  ;;  %1173 = vmatpush.msk.msrb.mxu3 %vm215_vm4, %v1348_v11 }
 0x3b3   :  { %1175 = vmatpush.msk.msrb.mxu0 %vm215_vm4, %v1358_v14  ;;  %1177 = vmatpush.msk.msra.mxu1 %vm215_vm4, %v1383_v18 }
 0x3b4   :  { %956 = vmatpush.msrb.mxu2 %v1360_v15  ;;  %980 = vmatpush.msrb.mxu3 %v1352_v13 }
 0x3b5   :  { %1004 = vmatpush.msrb.mxu0 %v1362_v16  ;;  %1028 = vmatpush.msra.mxu1 %v1385_v19 }
 0x42e   :  { %v764_v9 = vpop.f32.mrf.mxu0  ;;  %v788_v10 = vpop.f32.mrf.mxu1 }
 0x42f   :  { %v768_v24 = vrot.slane %v764_v9, 6  ;;  %v792_v28 = vrot.slane %v788_v10, 6 }
 0x431   :  { %v770_v13 = vadd.f32 %v768_v24, %v1511_v17  ;;  %v794_v16 = vadd.f32 %v792_v28, %v1507_v58 }
 0x433   :  { %v716_v12 = vpop.f32.mrf.mxu2  ;;  %v740_v21 = vpop.f32.mrf.mxu3  ;;  %v804_v19 = vmul.f32 0.5, %v794_v16 }
 0x434   :  { %v720_v23 = vrot.slane %v716_v12, 6  ;;  %v744_v11 = vrot.slane %v740_v21, 6 }
 0x436   :  { %v722_v14 = vadd.f32 %v720_v23, %v1497_v49  ;;  %v746_v18 = vadd.f32 %v744_v11, %v1501_v51  ;;  %v1059_v23 = vld [vmem:[#allocation2 + $0x50] sm:$0x3]  ;;  %v1058_v11 = vld [vmem:[#allocation2 + $0x48] sm:$0xff] }
 0x438   :  { %v795_v30 = vmul.f32 0.5, %v722_v14  ;;  %v799_v15 = vmul.f32 0.5, %v746_v18 }
 0x43a   :  { %1238 = vtanh.f32 %v795_v30 }
 0x43b   :  { %1240 = vtanh.f32 %v799_v15 }
 0x43c   :  { %1242 = vtanh.f32 %v770_v13 }
 0x43d   :  { %1244 = vtanh.f32 %v804_v19 }
 0x440   :  { %v1239_v31 = vpop.eup %1238 }
 0x441   :  { %v1241_v32 = vpop.eup %1240  ;;  %v797_v33 = vadd.f32 1.0, %v1239_v31 }
 0x442   :  { %v801_v34 = vadd.f32 1.0, %v1241_v32  ;;  %v1243_v36 = vpop.eup %1242 }
 0x443   :  { %v798_v35 = vmul.f32 0.5, %v797_v33  ;;  %v1245_v39 = vpop.eup %1244 }
 0x444   :  { %v802_v37 = vmul.f32 0.5, %v801_v34  ;;  %v806_v44 = vadd.f32 1.0, %v1245_v39 }
 0x445   :  { %v812_v38 = vmul.f32 %v1243_v36, %v798_v35 }
 0x446   :  { %v811_v50 = vmul.f32 %v809_v22, %v802_v37  ;;  %v807_v29 = vmul.f32 0.5, %v806_v44 }
 0x448   :  { %v813_v40 = vadd.f32 %v812_v38, %v811_v50 }
 0x44a   :  { %1246 = vtanh.f32 %v813_v40  ;;  %v930_v3 = vrot.slane %v813_v40, 6 }
 0x450   :  { %v1247_v25 = vpop.eup %1246 }
 0x451   :  { %v815_v45 = vmul.f32 %v1247_v25, %v807_v29 }
 0x453   :  { %v817_v47 = vrot.slane %v815_v45, 2 }
 0x455   :  { %1164 = vmatmul.msk.f32.vlgmr.msra.gmra.mxu2 %vm211_vm5, %v817_v47  ;;  %1166 = vmatmul.msk.f32.vlgmr.msra.gmra.mxu3 %vm211_vm5, %v817_v47 }
 0x456   :  { %1168 = vmatmul.msk.f32.vlgmr.msra.gmra.mxu0 %vm211_vm5, %v817_v47  ;;  %1170 = vmatmul.msk.f32.vlgmr.msrb.gmra.mxu1 %vm211_vm5, %v817_v47 }
 0x457   :  { %1179 = vmatpush.msk.msra.mxu2 %vm215_vm4, %v1059_v23 }
 0x459   :  { %1084 = vmatpush.msra.mxu2 %v1058_v11 }
 0x4d3   :  { %v885_v48 = vpop.f32.mrf.mxu0  ;;  %v909_v52 = vpop.f32.mrf.mxu1 }
 0x4d4   :  { %v889_v57 = vrot.slane %v885_v48, 4  ;;  %v913_v41 = vrot.slane %v909_v52, 4 }
 0x4d6   :  { %v891_v61 = vadd.f32 %v889_v57, %v1511_v17  ;;  %v915_v62 = vadd.f32 %v913_v41, %v1507_v58 }
 0x4d8   :  { %v837_v53 = vpop.f32.mrf.mxu2  ;;  %v861_v54 = vpop.f32.mrf.mxu3  ;;  %v925_v63 = vmul.f32 0.5, %v915_v62 }
 0x4d9   :  { %v841_v55 = vrot.slane %v837_v53, 4  ;;  %v865_v56 = vrot.slane %v861_v54, 4  ;;  %v1189_v53 = vld [vmem:[#allocation2 + $0x52] ss:$0 sm:$0xff] }
 0x4db   :  { %v843_v59 = vadd.f32 %v841_v55, %v1497_v49  ;;  %v867_v42 = vadd.f32 %v865_v56, %v1501_v51 }
 0x4dd   :  { %v916_v46 = vmul.f32 0.5, %v843_v59  ;;  %v920_v60 = vmul.f32 0.5, %v867_v42 }
 0x4df   :  { %1248 = vtanh.f32 %v916_v46 }
 0x4e0   :  { %1250 = vtanh.f32 %v920_v60 }
 0x4e1   :  { %1252 = vtanh.f32 %v891_v61 }
 0x4e2   :  { %1254 = vtanh.f32 %v925_v63 }
 0x4e5   :  { %v1249_v20 = vpop.eup %1248 }
 0x4e6   :  { %v1251_v27 = vpop.eup %1250  ;;  %v918_v0 = vadd.f32 1.0, %v1249_v20 }
 0x4e7   :  { %v922_v1 = vadd.f32 1.0, %v1251_v27  ;;  %v1253_v43 = vpop.eup %1252 }
 0x4e8   :  { %v919_v26 = vmul.f32 0.5, %v918_v0  ;;  %v1255_v6 = vpop.eup %1254 }
 0x4e9   :  { %v923_v2 = vmul.f32 0.5, %v922_v1  ;;  %v927_v8 = vadd.f32 1.0, %v1255_v6 }
 0x4ea   :  { %v933_v4 = vmul.f32 %v1253_v43, %v919_v26 }
 0x4eb   :  { %v932_v5 = vmul.f32 %v930_v3, %v923_v2  ;;  %v928_v9 = vmul.f32 0.5, %v927_v8 }
 0x4ed   :  { %v934_v7 = vadd.f32 %v933_v4, %v932_v5 }
 0x4ef   :  { %1256 = vtanh.f32 %v934_v7  ;;  %v1051_v44 = vrot.slane %v934_v7, 6 }
 0x4f5   :  { %v1257_v10 = vpop.eup %1256 }
 0x4f6   :  { %v936_v12 = vmul.f32 %v1257_v10, %v928_v9 }
 0x4f8   :  { %v938_v21 = vrot.slane %v936_v12, 4 }
 0x4fa   :  { %1172 = vmatmul.msk.f32.vlgmr.msrb.gmra.mxu2 %vm211_vm5, %v938_v21  ;;  %1174 = vmatmul.msk.f32.vlgmr.msrb.gmra.mxu3 %vm211_vm5, %v938_v21 }
 0x4fb   :  { %1176 = vmatmul.msk.f32.vlgmr.msrb.gmra.mxu0 %vm211_vm5, %v938_v21  ;;  %1178 = vmatmul.msk.f32.vlgmr.msra.gmra.mxu1 %vm211_vm5, %v938_v21 }
 0x578   :  { %v1006_v24 = vpop.f32.mrf.mxu0  ;;  %v1030_v28 = vpop.f32.mrf.mxu1 }
 0x579   :  { %v1010_v13 = vrot.slane %v1006_v24, 2  ;;  %v1034_v16 = vrot.slane %v1030_v28, 2 }
 0x57b   :  { %v1012_v34 = vadd.f32 %v1010_v13, %v1511_v17  ;;  %v1036_v35 = vadd.f32 %v1034_v16, %v1507_v58 }
 0x57d   :  { %v958_v14 = vpop.f32.mrf.mxu2  ;;  %v982_v18 = vpop.f32.mrf.mxu3  ;;  %v1046_v36 = vmul.f32 0.5, %v1036_v35 }
 0x57e   :  { %v962_v30 = vrot.slane %v958_v14, 2  ;;  %v986_v15 = vrot.slane %v982_v18, 2 }
 0x580   :  { %v964_v19 = vadd.f32 %v962_v30, %v1497_v49  ;;  %v988_v31 = vadd.f32 %v986_v15, %v1501_v51 }
 0x582   :  { %v1037_v32 = vmul.f32 0.5, %v964_v19  ;;  %v1041_v33 = vmul.f32 0.5, %v988_v31 }
 0x584   :  { %1258 = vtanh.f32 %v1037_v32 }
 0x585   :  { %1260 = vtanh.f32 %v1041_v33 }
 0x586   :  { %1262 = vtanh.f32 %v1012_v34 }
 0x587   :  { %1264 = vtanh.f32 %v1046_v36 }
 0x58a   :  { %v1259_v37 = vpop.eup %1258 }
 0x58b   :  { %v1261_v22 = vpop.eup %1260  ;;  %v1039_v38 = vadd.f32 1.0, %v1259_v37 }
 0x58c   :  { %v1043_v50 = vadd.f32 1.0, %v1261_v22  ;;  %v1263_v40 = vpop.eup %1262 }
 0x58d   :  { %v1040_v39 = vmul.f32 0.5, %v1039_v38  ;;  %v1265_v25 = vpop.eup %1264 }
 0x58e   :  { %v1044_v49 = vmul.f32 0.5, %v1043_v50  ;;  %v1048_v17 = vadd.f32 1.0, %v1265_v25 }
 0x58f   :  { %v1054_v51 = vmul.f32 %v1263_v40, %v1040_v39 }
 0x590   :  { %v1053_v29 = vmul.f32 %v1051_v44, %v1044_v49  ;;  %v1049_v58 = vmul.f32 0.5, %v1048_v17 }
 0x592   :  { %v1055_v45 = vadd.f32 %v1054_v51, %v1053_v29 }
 0x594   :  { %1266 = vtanh.f32 %v1055_v45 }
 0x59a   :  { %v1267_v47 = vpop.eup %1266 }
 0x59b   :  { %v1057_v48 = vmul.f32 %v1267_v47, %v1049_v58 }
 0x59d   :  { %v1063_v52 = vrot.slane %v1057_v48, 6 }
 0x59f   :  { %1180 = vmatmul.msk.f32.vlgmr.msra.gmra.mxu2 %vm211_vm5, %v1063_v52 }
 0x622   :  { %v1086_v54 = vpop.f32.mrf.mxu2 }
 0x623   :  { %v1087_v55 = vadd.f32 %v1189_v53, %v1086_v54 }
 0x625   :  { %1090 = vst.msk [vmem:[#allocation5] sm:$0x3] %vm1089_vm6, %v1087_v55 }
 0x626   :  { %1101 = dma.vmem_to_hbm [thread:$0]  %s1097_s19, 32, %s1099_s22, [#allocation4]  }
 0x627   :  { %1318 = dma.done.wait [#allocation4], 32  }
 0x628   :  { %1319 = vsyncadd [#allocation4], 4294967264 }
 0x629   :  { %1106 = vsyncpa [#allocation3], 1 }
 0x62a   :  { %1107 = vsyncpa [#allocation4], 1 }

</bundles_post_ra>
